<compile_context>
chip_gen: v6e
topology: v6e:2x2x1
jax: 0.10.0
libtpu: 0.0.40
codegen_flags: <defaults>
</compile_context>

<pallas_src>
import jax
import jax.numpy as jnp
from jax.experimental import pallas as pl
from jax.experimental.pallas import tpu as pltpu

LANE = 128


def _round_up(x: int, m: int) -> int:
    return (x + m - 1) // m * m


def _vmem_budget_bytes() -> int:
    """~0.8x physical VMEM (leaves compiler headroom); safe 64 MiB fallback."""
    try:
        cap = int(pltpu.get_tpu_info().vmem_capacity_bytes)
        if cap > 0:
            return min(int(cap * 0.8), 112 * 1024 * 1024)
    except Exception:
        pass
    return 64 * 1024 * 1024


def _choose_tiling(n, feat_dim, f_pad, h2_pad, h_pad, agg_first, vmem_budget):
    """Pick (tm, n_pad): biggest 128-multiple row tile whose working set fits VMEM."""
    if n <= 128:
        return 128, 128
    for tm in (256, 128):
        n_pad = _round_up(n, tm)
        need = (2 * tm * n_pad                                   # A int8 tile, dbl-buffered
                + 2 * n_pad * feat_dim * 2                       # resident features (bf16)
                + 2 * h2_pad * h_pad * 2                         # W2
                + (2 * f_pad * h2_pad * 2 if agg_first else 0)   # W1 (agg-first only)
                + 2 * tm * h_pad * 2                             # output tile (bf16)
                + n_pad * h_pad * 2                              # hw VMEM scratch
                + 6 * tm * max(feat_dim, h2_pad, h_pad) * 4)     # f32 temps headroom
        if need <= int(vmem_budget * 0.7):
            return tm, n_pad
    return 128, _round_up(n, 128)


# ---------------------------------------------------------------------------
# Fused 2-layer GCN kernels.
#   grid = (phase, row_tile)
#   phase 0, tile i:  h_i  = relu(layer-1 aggregation + b1)
#                     hw_i = h_i @ W2  -> staged in VMEM scratch (never hits HBM)
#   phase 1, tile i:  z_i  = relu(A_i @ hw_full + b2)   -> only HBM output write
# A comes in as int8; its dequant scale is already folded into XW1/W1 and W2.
# ---------------------------------------------------------------------------
def _gcn2_kernel_proj_first(a_ref, xw_ref, b1_ref, w2_ref, b2_ref, o_ref, hw_ref):
    phase = pl.program_id(0)
    i = pl.program_id(1)
    tm = a_ref.shape[0]

    @pl.when(phase == 0)
    def _layer1_and_project():
        a = a_ref[...].astype(jnp.bfloat16)
        h = jnp.maximum(
            jnp.dot(a, xw_ref[...], preferred_element_type=jnp.float32) + b1_ref[...],
            0.0)
        hw = jnp.dot(h.astype(jnp.bfloat16), w2_ref[...],
                     preferred_element_type=jnp.float32)
        row0 = pl.multiple_of(i * tm, tm)
        hw_ref[pl.ds(row0, tm), :] = hw.astype(hw_ref.dtype)
        # NOTE: o_ref intentionally NOT written in phase 0 (no wasted HBM writeback).

    @pl.when(phase == 1)
    def _layer2_aggregate():
        a = a_ref[...].astype(jnp.bfloat16)
        z = jnp.dot(a, hw_ref[...], preferred_element_type=jnp.float32) + b2_ref[...]
        o_ref[...] = jnp.maximum(z, 0.0).astype(o_ref.dtype)


def _gcn2_kernel_agg_first(a_ref, x_ref, w1_ref, b1_ref, w2_ref, b2_ref, o_ref, hw_ref):
    phase = pl.program_id(0)
    i = pl.program_id(1)
    tm = a_ref.shape[0]

    @pl.when(phase == 0)
    def _layer1_and_project():
        a = a_ref[...].astype(jnp.bfloat16)
        ax = jnp.dot(a, x_ref[...], preferred_element_type=jnp.float32)
        h = jnp.maximum(
            jnp.dot(ax.astype(jnp.bfloat16), w1_ref[...],
                    preferred_element_type=jnp.float32) + b1_ref[...],
            0.0)
        hw = jnp.dot(h.astype(jnp.bfloat16), w2_ref[...],
                     preferred_element_type=jnp.float32)
        row0 = pl.multiple_of(i * tm, tm)
        hw_ref[pl.ds(row0, tm), :] = hw.astype(hw_ref.dtype)

    @pl.when(phase == 1)
    def _layer2_aggregate():
        a = a_ref[...].astype(jnp.bfloat16)
        z = jnp.dot(a, hw_ref[...], preferred_element_type=jnp.float32) + b2_ref[...]
        o_ref[...] = jnp.maximum(z, 0.0).astype(o_ref.dtype)


# ---------------------------------------------------------------------------
# Dense normalized adjacency, built directly at padded shape and quantized to int8.
# ---------------------------------------------------------------------------
def build_norm_adj_q(edge_index, num_nodes, n_pad):
    """Returns (a_q int8 [n_pad, n_pad], dequant_scale f32 scalar)."""
    src = edge_index[0]
    dst = edge_index[1]
    a = jnp.zeros((n_pad, n_pad), jnp.float32).at[dst, src].set(1.0)   # msg src -> dst
    self_loop = (jnp.arange(n_pad) < num_nodes).astype(jnp.float32)
    a = jnp.minimum(a + jnp.diag(self_loop), 1.0)                      # self-loops (real rows)
    deg = a.sum(axis=1)
    dinv = jnp.where(deg > 0.0, jax.lax.rsqrt(jnp.maximum(deg, 1e-12)), 0.0)
    a_hat = a * dinv[:, None] * dinv[None, :]
    scale = jnp.maximum(jnp.max(a_hat), 1e-12) / 127.0
    a_q = jnp.round(a_hat / scale).astype(jnp.int8)                    # values in [0, 127]
    return a_q, scale


# ---------------------------------------------------------------------------
# GRACE forward = Encoder(k=2, skip=False) forward
# ---------------------------------------------------------------------------
def grace_forward(x, edge_index, params):
    w1, b1, w2, b2 = params["w1"], params["b1"], params["w2"], params["b2"]
    n, f_in = x.shape
    h2 = w1.shape[1]
    h = w2.shape[1]

    f_pad = _round_up(f_in, LANE)
    h2_pad = _round_up(h2, LANE)
    h_pad = _round_up(h, LANE)
    agg_first = f_pad < h2_pad            # aggregate-first only when it saves FLOPs/VMEM
    feat_dim = f_pad if agg_first else h2_pad

    vmem_budget = _vmem_budget_bytes()
    tm, n_pad = _choose_tiling(n, feat_dim, f_pad, h2_pad, h_pad, agg_first, vmem_budget)
    n_tiles = n_pad // tm

    a_q, a_scale = build_norm_adj_q(edge_index, n, n_pad)

    # Dequant scale folded into wrapper-side operands:  (A_q @ M) * s == A_q @ (s * M).
    b1_p = jnp.zeros((1, h2_pad), jnp.float32).at[0, :h2].set(b1.astype(jnp.float32))
    b2_p = jnp.zeros((1, h_pad), jnp.float32).at[0, :h].set(b2.astype(jnp.float32))
    w2_s = (w2.astype(jnp.float32) * a_scale).astype(jnp.bfloat16)
    w2_p = jnp.zeros((h2_pad, h_pad), jnp.bfloat16).at[:h2, :h].set(w2_s)

    if agg_first:
        kernel = _gcn2_kernel_agg_first
        x_p = jnp.zeros((n_pad, f_pad), jnp.bfloat16).at[:n, :f_in].set(x.astype(jnp.bfloat16))
        w1_s = (w1.astype(jnp.float32) * a_scale).astype(jnp.bfloat16)
        w1_p = jnp.zeros((f_pad, h2_pad), jnp.bfloat16).at[:f_in, :h2].set(w1_s)
        operands = (a_q, x_p, w1_p, b1_p, w2_p, b2_p)
        feat_specs = [
            pl.BlockSpec((n_pad, f_pad), lambda p, i: (0, 0)),      # X (resident)
            pl.BlockSpec((f_pad, h2_pad), lambda p, i: (0, 0)),     # W1 (scale folded)
        ]
        l1_flops = 2 * n_pad * n_pad * f_pad + 2 * n_pad * f_pad * h2_pad
        feat_bytes = n_pad * f_pad * 2 + f_pad * h2_pad * 2
    else:
        kernel = _gcn2_kernel_proj_first
        # Project first: the tiny (n, f_in) x (f_in, 2h) matmul is done once here.
        xw = (x.astype(jnp.float32) @ w1.astype(jnp.float32)) * a_scale
        xw_p = jnp.zeros((n_pad, h2_pad), jnp.bfloat16).at[:n, :h2].set(xw.astype(jnp.bfloat16))
        operands = (a_q, xw_p, b1_p, w2_p, b2_p)
        feat_specs = [
            pl.BlockSpec((n_pad, h2_pad), lambda p, i: (0, 0)),     # X @ W1 (resident)
        ]
        l1_flops = 2 * n_pad * n_pad * h2_pad
        feat_bytes = n_pad * h2_pad * 2

    in_specs = (
        [pl.BlockSpec((tm, n_pad), lambda p, i: (i, 0))]            # A_q int8 row tile
        + feat_specs
        + [
            pl.BlockSpec((1, h2_pad), lambda p, i: (0, 0)),         # b1
            pl.BlockSpec((h2_pad, h_pad), lambda p, i: (0, 0)),     # W2 (scale folded)
            pl.BlockSpec((1, h_pad), lambda p, i: (0, 0)),          # b2
        ]
    )
    # All phase-0 steps map the output to block 0 (never written there), so the only
    # HBM output traffic is one bf16 tile per phase-1 step.
    out_spec = pl.BlockSpec((tm, h_pad), lambda p, i: (i * p, 0))

    flops = (l1_flops
             + 2 * n_pad * h2_pad * h_pad        # h @ W2
             + 2 * n_pad * n_pad * h_pad)        # A @ (h W2)
    bytes_accessed = (2 * n_pad * n_pad          # A (int8) read once per phase
                      + feat_bytes
                      + h2_pad * h_pad * 2
                      + (h2_pad + h_pad) * 4
                      + n_pad * h_pad * 2)       # output written once (bf16)

    out = pl.pallas_call(
        kernel,
        out_shape=jax.ShapeDtypeStruct((n_pad, h_pad), jnp.bfloat16),
        grid_spec=pltpu.PrefetchScalarGridSpec(
            num_scalar_prefetch=0,
            grid=(2, n_tiles),
            in_specs=in_specs,
            out_specs=out_spec,
            scratch_shapes=[pltpu.VMEM((n_pad, h_pad), jnp.bfloat16)],   # projected hidden
        ),
        compiler_params=pltpu.CompilerParams(
            # Phase axis is a true dependency; row axis feeds the cross-tile VMEM
            # scratch, so both must stay sequential (see v7x un-fuse TODO above).
            dimension_semantics=("arbitrary", "arbitrary"),
            vmem_limit_bytes=int(vmem_budget),
        ),
        cost_estimate=pl.CostEstimate(
            flops=int(flops), transcendentals=0, bytes_accessed=int(bytes_accessed)),
    )(*operands)

    return out[:n, :h]


# ---------------------------------------------------------------------------
# Pure-JAX f32 reference for correctness checking.
# ---------------------------------------------------------------------------
def grace_forward_ref(x, edge_index, params):
    n = x.shape[0]
    src, dst = edge_index[0], edge_index[1]
    a = jnp.zeros((n, n), jnp.float32).at[dst, src].set(1.0)
    a = jnp.minimum(a + jnp.eye(n, dtype=jnp.float32), 1.0)
    deg = a.sum(axis=1)
    dinv = jax.lax.rsqrt(deg)
    a_hat = a * dinv[:, None] * dinv[None, :]
    h = jax.nn.relu(a_hat @ (x @ params["w1"]) + params["b1"])
    z = jax.nn.relu(a_hat @ (h @ params["w2"]) + params["b2"])
    return z


def init_params(key, in_channels, num_hidden):
    k1, k2, k3, k4 = jax.random.split(key, 4)
    hid2 = 2 * num_hidden
    w1 = jax.random.normal(k1, (in_channels, hid2), jnp.float32) * (1.0 / jnp.sqrt(in_channels))
    b1 = jax.random.normal(k2, (hid2,), jnp.float32) * 0.01
    w2 = jax.random.normal(k3, (hid2, num_hidden), jnp.float32) * (1.0 / jnp.sqrt(hid2))
    b2 = jax.random.normal(k4, (num_hidden,), jnp.float32) * 0.01
    return {"w1": w1, "b1": b1, "w2": w2, "b2": b2}


if __name__ == "__main__":
    key = jax.random.PRNGKey(0)
    kx, kp = jax.random.split(key)

    num_nodes = 8
    in_channels = 16
    num_hidden = 32   # encoder out_channels == GRACE num_hidden

    # deterministic node features
    x = jax.random.normal(kx, (num_nodes, in_channels), jnp.float32)

    # deterministic edge_index: bidirectional ring graph, shape [2, 2N]
    idx = jnp.arange(num_nodes, dtype=jnp.int32)
    nxt = (idx + 1) % num_nodes
    edge_index = jnp.concatenate(
        [jnp.stack([idx, nxt], axis=0), jnp.stack([nxt, idx], axis=0)], axis=1)

    params = init_params(kp, in_channels, num_hidden)

    z = jax.jit(grace_forward)(x, edge_index, params)
    z = jax.block_until_ready(z)

    z_ref = grace_forward_ref(x, edge_index, params)

    assert z.shape == (num_nodes, num_hidden)
    assert bool(jnp.all(jnp.isfinite(z)))
    # int8 A + bf16 operands + f32 accumulation -> loose tolerance vs the f32 reference
    zf = z.astype(jnp.float32)
    assert bool(jnp.allclose(zf, z_ref, rtol=5e-2, atol=5e-2)), \
        float(jnp.max(jnp.abs(zf - z_ref)))

    print("KERNEL_OK")
</pallas_src>

<mosaic_0001>
module attributes {stable_mosaic.version = 11 : i64} {
  func.func @_gcn2_kernel_proj_first(%arg0: i32, %arg1: i32, %arg2: memref<128x128xi8, #tpu.memory_space<vmem>>, %arg3: memref<128x128xbf16, #tpu.memory_space<vmem>>, %arg4: memref<1x128xf32, #tpu.memory_space<vmem>>, %arg5: memref<128x128xbf16, #tpu.memory_space<vmem>>, %arg6: memref<1x128xf32, #tpu.memory_space<vmem>>, %arg7: memref<128x128xbf16, #tpu.memory_space<vmem>>, %arg8: memref<128x128xbf16, #tpu.memory_space<vmem>>) attributes {dimension_semantics = [#tpu.dimension_semantics<arbitrary>, #tpu.dimension_semantics<arbitrary>], iteration_bounds = array<i64: 2, 1>, scalar_prefetch = 0 : i64, scratch_operands = 1 : i64, tpu.core_type = #tpu.core_type<tc>, window_params = [{transform_indices = @transform_0, window_bounds = array<i64: 128, 128>}, {pipeline_mode = #tpu.pipeline_mode<synchronous>, transform_indices = @transform_1, window_bounds = array<i64: 128, 128>}, {pipeline_mode = #tpu.pipeline_mode<synchronous>, transform_indices = @transform_2, window_bounds = array<i64: 1, 128>}, {pipeline_mode = #tpu.pipeline_mode<synchronous>, transform_indices = @transform_3, window_bounds = array<i64: 128, 128>}, {pipeline_mode = #tpu.pipeline_mode<synchronous>, transform_indices = @transform_4, window_bounds = array<i64: 1, 128>}, {transform_indices = @transform_5, window_bounds = array<i64: 128, 128>}]} {
    %c0_i32 = arith.constant 0 : i32
    %0 = arith.cmpi eq, %arg0, %c0_i32 : i32
    %1 = arith.extui %0 : i1 to i32
    %c0_i32_0 = arith.constant 0 : i32
    %2 = arith.cmpi ne, %1, %c0_i32_0 : i32
    scf.if %2 {
      %c0 = arith.constant 0 : index
      %c0_2 = arith.constant 0 : index
      %6 = vector.load %arg2[%c0, %c0_2] : memref<128x128xi8, #tpu.memory_space<vmem>>, vector<128x128xi8>
      %7 = arith.sitofp %6 : vector<128x128xi8> to vector<128x128xbf16>
      %c0_3 = arith.constant 0 : index
      %c0_4 = arith.constant 0 : index
      %8 = vector.load %arg3[%c0_3, %c0_4] : memref<128x128xbf16, #tpu.memory_space<vmem>>, vector<128x128xbf16>
      %cst = arith.constant dense<0.000000e+00> : vector<128x128xf32>
      %9 = tpu.matmul %7, %8, %cst {dimension_numbers = #tpu.dot_dimension_numbers<[1], [0], [0], [1], [0, 0, 1, 1], [], []>} : vector<128x128xbf16>, vector<128x128xbf16>, vector<128x128xf32> -> vector<128x128xf32>
      %c0_5 = arith.constant 0 : index
      %c0_6 = arith.constant 0 : index
      %10 = vector.load %arg4[%c0_5, %c0_6] : memref<1x128xf32, #tpu.memory_space<vmem>>, vector<1x128xf32>
      %11 = vector.broadcast %10 : vector<1x128xf32> to vector<128x128xf32>
      %12 = arith.addf %9, %11 : vector<128x128xf32>
      %cst_7 = arith.constant 0.000000e+00 : f32
      %13 = vector.broadcast %cst_7 : f32 to vector<128x128xf32>
      %14 = arith.maximumf %12, %13 : vector<128x128xf32>
      %15 = arith.truncf %14 : vector<128x128xf32> to vector<128x128xbf16>
      %c0_8 = arith.constant 0 : index
      %c0_9 = arith.constant 0 : index
      %16 = vector.load %arg5[%c0_8, %c0_9] : memref<128x128xbf16, #tpu.memory_space<vmem>>, vector<128x128xbf16>
      %cst_10 = arith.constant dense<0.000000e+00> : vector<128x128xf32>
      %17 = tpu.matmul %15, %16, %cst_10 {dimension_numbers = #tpu.dot_dimension_numbers<[1], [0], [0], [1], [0, 0, 1, 1], [], []>} : vector<128x128xbf16>, vector<128x128xbf16>, vector<128x128xf32> -> vector<128x128xf32>
      %c128_i32 = arith.constant 128 : i32
      %18 = arith.muli %arg1, %c128_i32 : i32
      %19 = tpu.assume_multiple %18, 128 : i32
      %20 = arith.truncf %17 : vector<128x128xf32> to vector<128x128xbf16>
      %21 = arith.index_cast %19 : i32 to index
      %c0_11 = arith.constant 0 : index
      %22 = vector.load %arg8[%21, %c0_11] : memref<128x128xbf16, #tpu.memory_space<vmem>>, vector<128x128xbf16>
      tpu.vector_store %arg8[%21, %c0_11], %20 {strides = array<i32>} : memref<128x128xbf16, #tpu.memory_space<vmem>>, vector<128x128xbf16>,
    } else {
    }
    %c1_i32 = arith.constant 1 : i32
    %3 = arith.cmpi eq, %arg0, %c1_i32 : i32
    %4 = arith.extui %3 : i1 to i32
    %c0_i32_1 = arith.constant 0 : i32
    %5 = arith.cmpi ne, %4, %c0_i32_1 : i32
    scf.if %5 {
      %c0 = arith.constant 0 : index
      %c0_2 = arith.constant 0 : index
      %6 = vector.load %arg2[%c0, %c0_2] : memref<128x128xi8, #tpu.memory_space<vmem>>, vector<128x128xi8>
      %7 = arith.sitofp %6 : vector<128x128xi8> to vector<128x128xbf16>
      %c0_3 = arith.constant 0 : index
      %c0_4 = arith.constant 0 : index
      %8 = vector.load %arg8[%c0_3, %c0_4] : memref<128x128xbf16, #tpu.memory_space<vmem>>, vector<128x128xbf16>
      %cst = arith.constant dense<0.000000e+00> : vector<128x128xf32>
      %9 = tpu.matmul %7, %8, %cst {dimension_numbers = #tpu.dot_dimension_numbers<[1], [0], [0], [1], [0, 0, 1, 1], [], []>} : vector<128x128xbf16>, vector<128x128xbf16>, vector<128x128xf32> -> vector<128x128xf32>
      %c0_5 = arith.constant 0 : index
      %c0_6 = arith.constant 0 : index
      %10 = vector.load %arg6[%c0_5, %c0_6] : memref<1x128xf32, #tpu.memory_space<vmem>>, vector<1x128xf32>
      %11 = vector.broadcast %10 : vector<1x128xf32> to vector<128x128xf32>
      %12 = arith.addf %9, %11 : vector<128x128xf32>
      %cst_7 = arith.constant 0.000000e+00 : f32
      %13 = vector.broadcast %cst_7 : f32 to vector<128x128xf32>
      %14 = arith.maximumf %12, %13 : vector<128x128xf32>
      %15 = arith.truncf %14 : vector<128x128xf32> to vector<128x128xbf16>
      %c0_8 = arith.constant 0 : index
      %c0_9 = arith.constant 0 : index
      %16 = vector.load %arg7[%c0_8, %c0_9] : memref<128x128xbf16, #tpu.memory_space<vmem>>, vector<128x128xbf16>
      tpu.vector_store %arg7[%c0_8, %c0_9], %15 {strides = array<i32>} : memref<128x128xbf16, #tpu.memory_space<vmem>>, vector<128x128xbf16>,
    } else {
    }
    return
  }
  func.func @transform_0(%arg0: i32, %arg1: i32) -> (i32, i32) {
    %c0_i32 = arith.constant 0 : i32
    %c0_i32_0 = arith.constant 0 : i32
    return %arg1, %c0_i32 : i32, i32
  }
  func.func @transform_1(%arg0: i32, %arg1: i32) -> (i32, i32) {
    %c0_i32 = arith.constant 0 : i32
    %c0_i32_0 = arith.constant 0 : i32
    %c0_i32_1 = arith.constant 0 : i32
    return %c0_i32, %c0_i32_0 : i32, i32
  }
  func.func @transform_2(%arg0: i32, %arg1: i32) -> (i32, i32) {
    %c0_i32 = arith.constant 0 : i32
    %c0_i32_0 = arith.constant 0 : i32
    %c0_i32_1 = arith.constant 0 : i32
    return %c0_i32, %c0_i32_0 : i32, i32
  }
  func.func @transform_3(%arg0: i32, %arg1: i32) -> (i32, i32) {
    %c0_i32 = arith.constant 0 : i32
    %c0_i32_0 = arith.constant 0 : i32
    %c0_i32_1 = arith.constant 0 : i32
    return %c0_i32, %c0_i32_0 : i32, i32
  }
  func.func @transform_4(%arg0: i32, %arg1: i32) -> (i32, i32) {
    %c0_i32 = arith.constant 0 : i32
    %c0_i32_0 = arith.constant 0 : i32
    %c0_i32_1 = arith.constant 0 : i32
    return %c0_i32, %c0_i32_0 : i32, i32
  }
  func.func @transform_5(%arg0: i32, %arg1: i32) -> (i32, i32) {
    %0 = arith.muli %arg1, %arg0 : i32
    %c0_i32 = arith.constant 0 : i32
    %c0_i32_0 = arith.constant 0 : i32
    return %0, %c0_i32 : i32, i32
  }
}

</mosaic_0001>

<bundles_post_ra>
// kernel: grace_forward.1
= control target key start
LH: loop header
LB: loop body
LE: loop exit
PB: predicated region body
PF: predicated region fallthrough
CT: control target
= control target key end

     0   :  { %s1510_s18 = smov 0   ;;  %s1512_s19 = smov 0   ;;  %s1643_s0 = inlined_call_operand.vmem [shape: s8[128,128], index: 0, kind: input, shape index: {}]   ;;  %s1644_s1 = inlined_call_operand.vmem [shape: bf16[128,128], index: 1, kind: input, shape index: {}]   ;;  %s1645_s2 = inlined_call_operand.vmem [shape: f32[1,128], index: 2, kind: input, shape index: {}]   ;;  %s1646_s3 = inlined_call_operand.vmem [shape: bf16[128,128], index: 3, kind: input, shape index: {}]   ;;  %s1647_s4 = inlined_call_operand.vmem [shape: f32[1,128], index: 4, kind: input, shape index: {}]   ;;  %s1648_s5 = inlined_call_operand.vmem [shape: bf16[128,128], index: 5, kind: output, shape index: {}]  }
   0x1   :  { %s1514_s20 = smov 0  }
   0x2 LB: > { %s27_s21 = sadd.s32 1, %s1474_s19  ;;  %p1057_p0 = scmp.ge.s32.totalorder %s1478_s20, 1  ;;  %s1478_s20 = sphi %s1514_s20, %s15_s20   ;;  %s1474_s19 = sphi %s1512_s19, %s1650_s19   ;;  %s1470_s18 = sphi %s1510_s18, %s1649_s18  }
   0x3   : > { %p29_p1 = scmp.ge.s32.totalorder %s27_s21, 2  ;;  %p202_p2 = scmp.lt.s32.totalorder %s1478_s20, 3 }
   0x5   : > { %s1652_s21 = smov (%p29_p1, %s27_s21), 0  ;;  %p203_p3 = pnand %p1057_p0, %p202_p2 }
   0x6   : > { %p1058_p4 = scmp.ne.s32.totalorder (!%p203_p3), %s1470_s18, 0 }
   0x7   : > { %206 = sbr.rel (%p203_p3) target bundleno = 736 (0x2e0), region = 40 }
   0xc   : > { %249 = sbr.rel (%p1058_p4) target bundleno = 482 (0x1e2), region = 44 }
  0x11   : > { %v1432_v0 = vld [vmem:[%s1644_s1 + $0x38] sm:$0xff]   ;;  %v1433_v1 = vld [vmem:[%s1644_s1 + $0x30] sm:$0xff]   ;;  %v1434_v2 = vld [vmem:[%s1644_s1 + $0x28] sm:$0xff]  }
  0x12   : > { %1296 = vmatprep.subr.bf16.mxu0 %v1432_v0  ;;  %v1435_v3 = vld [vmem:[%s1644_s1 + $0x20] sm:$0xff]   ;;  %v1440_v6 = vld [vmem:[%s1646_s3 + $0x38] sm:$0xff]   ;;  %v1441_v7 = vld [vmem:[%s1646_s3 + $0x30] sm:$0xff]  }
  0x13   : > { %1297 = vmatpush3.bf16.msra.mxu0 %v1432_v0  ;;  %v250_v4 = vld [vmem:[%s1643_s0] sm:$0xff]  ;;  %v1436_v8 = vld [vmem:[%s1644_s1 + $0x18] sm:$0xff]   ;;  %1328 = vmatprep.subr.bf16.mxu1 %v1440_v6  ;;  %v1442_v9 = vld [vmem:[%s1646_s3 + $0x28] sm:$0xff]  }
  0x14   : > { %1298 = vmatprep.subr.bf16.mxu0 %v1433_v1  ;;  %v254_v5 = vunpack.c.l.s8.bf16 %v250_v4  ;;  %1329 = vmatpush3.bf16.msra.mxu1 %v1440_v6  ;;  %v1437_v10 = vld [vmem:[%s1644_s1 + $0x10] sm:$0xff]   ;;  %v1443_v11 = vld [vmem:[%s1646_s3 + $0x20] sm:$0xff]   ;;  %v1438_v12 = vld [vmem:[%s1644_s1 + $0x8] sm:$0xff]   ;;  %v255_v16 = vunpack.c.h.s8.bf16 %v250_v4 }
  0x15   : > { %1330 = vmatprep.subr.bf16.mxu1 %v1441_v7  ;;  %v1444_v13 = vld [vmem:[%s1646_s3 + $0x18] sm:$0xff]   ;;  %v1439_v14 = vld [vmem:[%s1644_s1] sm:$0xff]   ;;  %v251_v15 = vld [vmem:[%s1643_s0 + $0x8] sm:$0xff] }
  0x16   : > { %1312 = vmatprep.mubr.bf16.mxu0 %v254_v5  ;;  %v256_v17 = vunpack.c.l.s8.bf16 %v251_v15  ;;  %v252_v18 = vld [vmem:[%s1643_s0 + $0x10] sm:$0xff]  ;;  %v257_v19 = vunpack.c.h.s8.bf16 %v251_v15  ;;  %v253_v21 = vld [vmem:[%s1643_s0 + $0x18] sm:$0xff]  ;;  %v1446_v26 = vld [vmem:[%s1646_s3 + $0x8] sm:$0xff]  }
  0x17   : > { %1299 = vmatpush3.bf16.msra.mxu0 %v1433_v1  ;;  %v258_v20 = vunpack.c.l.s8.bf16 %v252_v18  ;;  %v259_v22 = vunpack.c.h.s8.bf16 %v252_v18  ;;  %v260_v23 = vunpack.c.l.s8.bf16 %v253_v21  ;;  %v261_v24 = vunpack.c.h.s8.bf16 %v253_v21  ;;  %v1445_v25 = vld [vmem:[%s1646_s3 + $0x10] sm:$0xff]   ;;  %v1447_v27 = vld [vmem:[%s1646_s3] sm:$0xff]  }
  0x18   : > { %1300 = vmatprep.subr.bf16.mxu0 %v1434_v2  ;;  %1331 = vmatpush3.bf16.msra.mxu1 %v1441_v7  ;;  %v1059_v30 = vld [vmem:[%s1645_s2] ss:$0 sm:$0xff] }
  0x19   : > { %1332 = vmatprep.subr.bf16.mxu1 %v1442_v9 }
  0x1b   : > { %1301 = vmatpush3.bf16.msra.mxu0 %v1434_v2 }
  0x1c   : > { %1302 = vmatprep.subr.bf16.mxu0 %v1435_v3  ;;  %1333 = vmatpush3.bf16.msra.mxu1 %v1442_v9 }
  0x1d   : > { %1334 = vmatprep.subr.bf16.mxu1 %v1443_v11 }
  0x1f   : > { %1303 = vmatpush3.bf16.msra.mxu0 %v1435_v3 }
  0x20   : > { %1304 = vmatprep.subr.bf16.mxu0 %v1436_v8  ;;  %1335 = vmatpush3.bf16.msra.mxu1 %v1443_v11 }
  0x21   : > { %1336 = vmatprep.subr.bf16.mxu1 %v1444_v13 }
  0x23   : > { %1305 = vmatpush3.bf16.msra.mxu0 %v1436_v8 }
  0x24   : > { %1306 = vmatprep.subr.bf16.mxu0 %v1437_v10  ;;  %1337 = vmatpush3.bf16.msra.mxu1 %v1444_v13 }
  0x25   : > { %1338 = vmatprep.subr.bf16.mxu1 %v1445_v25 }
  0x27   : > { %1307 = vmatpush3.bf16.msra.mxu0 %v1437_v10 }
  0x28   : > { %1308 = vmatprep.subr.bf16.mxu0 %v1438_v12  ;;  %1339 = vmatpush3.bf16.msra.mxu1 %v1445_v25 }
  0x29   : > { %1340 = vmatprep.subr.bf16.mxu1 %v1446_v26 }
  0x2b   : > { %1309 = vmatpush3.bf16.msra.mxu0 %v1438_v12 }
  0x2c   : > { %1310 = vmatprep.subr.bf16.mxu0 %v1439_v14  ;;  %1341 = vmatpush3.bf16.msra.mxu1 %v1446_v26 }
  0x2d   : > { %1342 = vmatprep.subr.bf16.mxu1 %v1447_v27 }
  0x2f   : > { %1311 = vmatpush3.bf16.msra.mxu0 %v1439_v14 }
  0x30   : > { %1343 = vmatpush3.bf16.msra.mxu1 %v1447_v27 }
  0x32   : > { %1313 = vmatmul.mubr.bf16.vlgmr.msra.gmra.mxu0 %v255_v16 }
  0x33   : > { %1316 = vmatprep.mubr.bf16.mxu0 %v256_v17 }
  0x3a   : > { %1317 = vmatmul.mubr.bf16.gmra.mxu0 %v257_v19 }
  0x3b   : > { %1320 = vmatprep.mubr.bf16.mxu0 %v258_v20 }
  0x42   : > { %1321 = vmatmul.mubr.bf16.gmra.mxu0 %v259_v22 }
  0x43   : > { %1324 = vmatprep.mubr.bf16.mxu0 %v260_v23 }
  0x4a   : > { %1325 = vmatmul.mubr.bf16.gmra.mxu0 %v261_v24 }
  0xf2   : > { %v1314_v28 = vpop.f32.mrf.mxu0 }
  0xf3   : > { %v376_v34 = vadd.f32 %v1314_v28, %v1059_v30 }
  0xf4   : > { %v367_v29 = vpop.f32.mrf.mxu0 }
  0xf5   : > { %v368_v32 = vadd.f32 %v1059_v30, %v367_v29  ;;  %v432_v41 = vmax.f32 %v376_v34, 0.0 }
  0xf6   : > { %v1315_v31 = vpop.f32.mrf.mxu0 }
  0xf7   : > { %v379_v33 = vadd.f32 %v1315_v31, %v1059_v30  ;;  %v430_v39 = vmax.f32 %v368_v32, 0.0 }
  0xf8   : > { %v370_v35 = vpop.f32.mrf.mxu0 }
  0xf9   : > { %v371_v36 = vadd.f32 %v1059_v30, %v370_v35  ;;  %v433_v37 = vmax.f32 %v379_v33, 0.0 }
  0xfa   : > { %v1318_v38 = vpop.f32.mrf.mxu0 }
  0xfb   : > { %v431_v40 = vmax.f32 %v371_v36, 0.0  ;;  %v447_v44 = vpack.c.bf16 %v433_v37, %v432_v41  ;;  %v392_v48 = vadd.f32 %v1318_v38, %v1059_v30 }
  0xfc   : > { %v383_v42 = vpop.f32.mrf.mxu0 }
  0xfd   : > { %v446_v43 = vpack.c.bf16 %v431_v40, %v430_v39  ;;  %v384_v46 = vadd.f32 %v1059_v30, %v383_v42  ;;  %v436_v55 = vmax.f32 %v392_v48, 0.0 }
  0xfe   : > { %v1319_v45 = vpop.f32.mrf.mxu0 }
  0xff   : > { %v395_v47 = vadd.f32 %v1319_v45, %v1059_v30  ;;  %1344 = vmatprep.mubr.bf16.mxu1 %v446_v43  ;;  %v434_v53 = vmax.f32 %v384_v46, 0.0 }
 0x100   : > { %v386_v49 = vpop.f32.mrf.mxu0  ;;  %1345 = vmatmul.mubr.bf16.vlgmr.msra.gmra.mxu1 %v447_v44 }
 0x101   : > { %v387_v50 = vadd.f32 %v1059_v30, %v386_v49  ;;  %v437_v51 = vmax.f32 %v395_v47, 0.0 }
 0x102   : > { %v1322_v52 = vpop.f32.mrf.mxu0 }
 0x103   : > { %v435_v54 = vmax.f32 %v387_v50, 0.0  ;;  %v449_v58 = vpack.c.bf16 %v437_v51, %v436_v55  ;;  %v408_v62 = vadd.f32 %v1322_v52, %v1059_v30 }
 0x104   : > { %v399_v56 = vpop.f32.mrf.mxu0 }
 0x105   : > { %v448_v57 = vpack.c.bf16 %v435_v54, %v434_v53  ;;  %v400_v60 = vadd.f32 %v1059_v30, %v399_v56  ;;  %v440_v5 = vmax.f32 %v408_v62, 0.0 }
 0x106   : > { %v1323_v59 = vpop.f32.mrf.mxu0 }
 0x107   : > { %v411_v61 = vadd.f32 %v1323_v59, %v1059_v30  ;;  %1348 = vmatprep.mubr.bf16.mxu1 %v448_v57  ;;  %v438_v3 = vmax.f32 %v400_v60, 0.0 }
 0x108   : > { %v402_v63 = vpop.f32.mrf.mxu0  ;;  %1349 = vmatmul.mubr.bf16.gmra.mxu1 %v449_v58 }
 0x109   : > { %v403_v0 = vadd.f32 %v1059_v30, %v402_v63  ;;  %v441_v1 = vmax.f32 %v411_v61, 0.0 }
 0x10a   : > { %v1326_v2 = vpop.f32.mrf.mxu0 }
 0x10b   : > { %v439_v4 = vmax.f32 %v403_v0, 0.0  ;;  %v451_v8 = vpack.c.bf16 %v441_v1, %v440_v5  ;;  %v424_v12 = vadd.f32 %v1326_v2, %v1059_v30 }
 0x10c   : > { %v415_v6 = vpop.f32.mrf.mxu0 }
 0x10d   : > { %v450_v7 = vpack.c.bf16 %v439_v4, %v438_v3  ;;  %v416_v10 = vadd.f32 %v1059_v30, %v415_v6  ;;  %v444_v18 = vmax.f32 %v424_v12, 0.0 }
 0x10e   : > { %v1327_v9 = vpop.f32.mrf.mxu0 }
 0x10f   : > { %v427_v11 = vadd.f32 %v1327_v9, %v1059_v30  ;;  %1352 = vmatprep.mubr.bf16.mxu1 %v450_v7  ;;  %v442_v16 = vmax.f32 %v416_v10, 0.0 }
 0x110   : > { %v418_v13 = vpop.f32.mrf.mxu0  ;;  %1353 = vmatmul.mubr.bf16.gmra.mxu1 %v451_v8 }
 0x111   : > { %v419_v14 = vadd.f32 %v1059_v30, %v418_v13  ;;  %v445_v15 = vmax.f32 %v427_v11, 0.0 }
 0x113   : > { %v443_v17 = vmax.f32 %v419_v14, 0.0  ;;  %v453_v20 = vpack.c.bf16 %v445_v15, %v444_v18 }
 0x115   : > { %v452_v19 = vpack.c.bf16 %v443_v17, %v442_v16 }
 0x117   : > { %1356 = vmatprep.mubr.bf16.mxu1 %v452_v19 }
 0x118   : > { %1357 = vmatmul.mubr.bf16.gmra.mxu1 %v453_v20 }
 0x1c0   : > { %v1346_v21 = vpop.f32.mrf.mxu1 }
 0x1c2   : > { %v552_v22 = vpop.f32.mrf.mxu1 }
 0x1c4   : > { %v1347_v23 = vpop.f32.mrf.mxu1 }
 0x1c5   : > { %v1162_v24 = vpack.c.bf16 %v1347_v23, %v1346_v21 }
 0x1c6   : > { %v555_v25 = vpop.f32.mrf.mxu1 }
 0x1c7   : > { %1234 = vst [vmem:[#allocation2 + $0x8] sm:$0xff] %v1162_v24   ;;  %v1157_v26 = vpack.c.bf16 %v555_v25, %v552_v22 }
 0x1c8   : > { %v1350_v27 = vpop.f32.mrf.mxu1 }
 0x1c9   : > { %1158 = vst [vmem:[#allocation2] sm:$0xff] %v1157_v26  }
 0x1ca   : > { %v568_v28 = vpop.f32.mrf.mxu1 }
 0x1cc   : > { %v1351_v29 = vpop.f32.mrf.mxu1 }
 0x1cd   : > { %v1172_v30 = vpack.c.bf16 %v1351_v29, %v1350_v27 }
 0x1ce   : > { %v571_v31 = vpop.f32.mrf.mxu1 }
 0x1cf   : > { %1236 = vst [vmem:[#allocation2 + $0x18] sm:$0xff] %v1172_v30   ;;  %v1167_v32 = vpack.c.bf16 %v571_v31, %v568_v28 }
 0x1d0   : > { %v1354_v33 = vpop.f32.mrf.mxu1 }
 0x1d1   : > { %1235 = vst [vmem:[#allocation2 + $0x10] sm:$0xff] %v1167_v32  }
 0x1d2   : > { %v584_v34 = vpop.f32.mrf.mxu1 }
 0x1d4   : > { %v1355_v35 = vpop.f32.mrf.mxu1 }
 0x1d5   : > { %v1182_v36 = vpack.c.bf16 %v1355_v35, %v1354_v33 }
 0x1d6   : > { %v587_v37 = vpop.f32.mrf.mxu1 }
 0x1d7   : > { %1238 = vst [vmem:[#allocation2 + $0x28] sm:$0xff] %v1182_v36   ;;  %v1177_v38 = vpack.c.bf16 %v587_v37, %v584_v34 }
 0x1d8   : > { %v1358_v39 = vpop.f32.mrf.mxu1 }
 0x1d9   : > { %1237 = vst [vmem:[#allocation2 + $0x20] sm:$0xff] %v1177_v38  }
 0x1da   : > { %v600_v40 = vpop.f32.mrf.mxu1 }
 0x1dc   : > { %v1359_v41 = vpop.f32.mrf.mxu1 }
 0x1dd   : > { %v1192_v42 = vpack.c.bf16 %v1359_v41, %v1358_v39 }
 0x1de   : > { %v603_v43 = vpop.f32.mrf.mxu1 }
 0x1df   : > { %1240 = vst [vmem:[#allocation2 + $0x38] sm:$0xff] %v1192_v42   ;;  %v1187_v44 = vpack.c.bf16 %v603_v43, %v600_v40 }
 0x1e1   : > { %1239 = vst [vmem:[#allocation2 + $0x30] sm:$0xff] %v1187_v44  }
 0x1e2 PF: > { %p1092_p5 = scmp.ne.s32.totalorder %s1470_s18, 1 }
 0x1e4   : > { %703 = sbr.rel (%p1092_p5) target bundleno = 736 (0x2e0), region = 48 }
 0x1e9   : > { %v1448_v45 = vld [vmem:[#allocation2 + $0x38] sm:$0xff]   ;;  %v1449_v46 = vld [vmem:[#allocation2 + $0x30] sm:$0xff]   ;;  %v1450_v47 = vld [vmem:[#allocation2 + $0x28] sm:$0xff]  }
 0x1ea   : > { %1360 = vmatprep.subr.bf16.mxu0 %v1448_v45  ;;  %1392 = vmatprep.subr.bf16.mxu1 %v1448_v45  ;;  %v1451_v48 = vld [vmem:[#allocation2 + $0x20] sm:$0xff]   ;;  %v706_v50 = vld [vmem:[%s1643_s0 + $0x10] sm:$0xff]  ;;  %v1452_v53 = vld [vmem:[#allocation2 + $0x18] sm:$0xff]  }
 0x1eb   : > { %1361 = vmatpush3.bf16.msra.mxu0 %v1448_v45  ;;  %1400 = vmatpush3.bf16.msra.mxu1 %v1448_v45  ;;  %v704_v49 = vld [vmem:[%s1643_s0] sm:$0xff]  ;;  %v712_v52 = vunpack.c.l.s8.bf16 %v706_v50  ;;  %v1453_v54 = vld [vmem:[#allocation2 + $0x10] sm:$0xff]   ;;  %v1454_v55 = vld [vmem:[#allocation2 + $0x8] sm:$0xff]   ;;  %v713_v60 = vunpack.c.h.s8.bf16 %v706_v50 }
 0x1ec   : > { %1362 = vmatprep.subr.bf16.mxu0 %v1449_v46  ;;  %1393 = vmatprep.subr.bf16.mxu1 %v1449_v46  ;;  %v708_v51 = vunpack.c.l.s8.bf16 %v704_v49  ;;  %v1455_v56 = vld [vmem:[#allocation2] sm:$0xff]   ;;  %v705_v57 = vld [vmem:[%s1643_s0 + $0x8] sm:$0xff]  ;;  %v707_v58 = vld [vmem:[%s1643_s0 + $0x18] sm:$0xff]  ;;  %v709_v59 = vunpack.c.h.s8.bf16 %v704_v49 }
 0x1ed   : > { %1384 = vmatprep.mubr.bf16.mxu1 %v712_v52  ;;  %v710_v61 = vunpack.c.l.s8.bf16 %v705_v57  ;;  %v714_v62 = vunpack.c.l.s8.bf16 %v707_v58  ;;  %v711_v63 = vunpack.c.h.s8.bf16 %v705_v57  ;;  %v715_v0 = vunpack.c.h.s8.bf16 %v707_v58  ;;  %v1093_v1 = vld [vmem:[%s1647_s4] ss:$0 sm:$0xff] }
 0x1ee   : > { %1376 = vmatprep.mubr.bf16.mxu0 %v708_v51 }
 0x1ef   : > { %1363 = vmatpush3.bf16.msra.mxu0 %v1449_v46  ;;  %1401 = vmatpush3.bf16.msra.mxu1 %v1449_v46 }
 0x1f0   : > { %1364 = vmatprep.subr.bf16.mxu0 %v1450_v47  ;;  %1394 = vmatprep.subr.bf16.mxu1 %v1450_v47 }
 0x1f3   : > { %1365 = vmatpush3.bf16.msra.mxu0 %v1450_v47  ;;  %1402 = vmatpush3.bf16.msra.mxu1 %v1450_v47 }
 0x1f4   : > { %1366 = vmatprep.subr.bf16.mxu0 %v1451_v48  ;;  %1395 = vmatprep.subr.bf16.mxu1 %v1451_v48 }
 0x1f7   : > { %1367 = vmatpush3.bf16.msra.mxu0 %v1451_v48  ;;  %1403 = vmatpush3.bf16.msra.mxu1 %v1451_v48 }
 0x1f8   : > { %1368 = vmatprep.subr.bf16.mxu0 %v1452_v53  ;;  %1396 = vmatprep.subr.bf16.mxu1 %v1452_v53 }
 0x1fb   : > { %1369 = vmatpush3.bf16.msra.mxu0 %v1452_v53  ;;  %1404 = vmatpush3.bf16.msra.mxu1 %v1452_v53 }
 0x1fc   : > { %1370 = vmatprep.subr.bf16.mxu0 %v1453_v54  ;;  %1397 = vmatprep.subr.bf16.mxu1 %v1453_v54 }
 0x1ff   : > { %1371 = vmatpush3.bf16.msra.mxu0 %v1453_v54  ;;  %1405 = vmatpush3.bf16.msra.mxu1 %v1453_v54 }
 0x200   : > { %1372 = vmatprep.subr.bf16.mxu0 %v1454_v55  ;;  %1398 = vmatprep.subr.bf16.mxu1 %v1454_v55 }
 0x203   : > { %1373 = vmatpush3.bf16.msra.mxu0 %v1454_v55  ;;  %1406 = vmatpush3.bf16.msra.mxu1 %v1454_v55 }
 0x204   : > { %1374 = vmatprep.subr.bf16.mxu0 %v1455_v56  ;;  %1399 = vmatprep.subr.bf16.mxu1 %v1455_v56 }
 0x207   : > { %1375 = vmatpush3.bf16.msra.mxu0 %v1455_v56  ;;  %1407 = vmatpush3.bf16.msra.mxu1 %v1455_v56 }
 0x20a   : > { %1377 = vmatmul.mubr.bf16.vlgmr.msra.gmra.mxu0 %v709_v59  ;;  %1385 = vmatmul.mubr.bf16.vlgmr.msra.gmra.mxu1 %v713_v60 }
 0x20b   : > { %1380 = vmatprep.mubr.bf16.mxu0 %v710_v61  ;;  %1388 = vmatprep.mubr.bf16.mxu1 %v714_v62 }
 0x212   : > { %1381 = vmatmul.mubr.bf16.gmra.mxu0 %v711_v63  ;;  %1389 = vmatmul.mubr.bf16.gmra.mxu1 %v715_v0 }
 0x2ca   : > { %v1378_v2 = vpop.f32.mrf.mxu0  ;;  %v1386_v3 = vpop.f32.mrf.mxu1 }
 0x2cb   : > { %v830_v4 = vadd.f32 %v1378_v2, %v1093_v1  ;;  %v862_v5 = vadd.f32 %v1386_v3, %v1093_v1 }
 0x2cc   : > { %v821_v6 = vpop.f32.mrf.mxu0  ;;  %v853_v7 = vpop.f32.mrf.mxu1 }
 0x2cd   : > { %v822_v8 = vadd.f32 %v1093_v1, %v821_v6  ;;  %v854_v9 = vadd.f32 %v1093_v1, %v853_v7  ;;  %v886_v14 = vmax.f32 %v830_v4, 0.0  ;;  %v894_v15 = vmax.f32 %v862_v5, 0.0 }
 0x2ce   : > { %v1379_v10 = vpop.f32.mrf.mxu0  ;;  %v1387_v11 = vpop.f32.mrf.mxu1 }
 0x2cf   : > { %v833_v12 = vadd.f32 %v1379_v10, %v1093_v1  ;;  %v865_v13 = vadd.f32 %v1387_v11, %v1093_v1  ;;  %v884_v22 = vmax.f32 %v822_v8, 0.0  ;;  %v892_v23 = vmax.f32 %v854_v9, 0.0 }
 0x2d0   : > { %v824_v16 = vpop.f32.mrf.mxu0  ;;  %v856_v17 = vpop.f32.mrf.mxu1 }
 0x2d1   : > { %v887_v18 = vmax.f32 %v833_v12, 0.0  ;;  %v895_v19 = vmax.f32 %v865_v13, 0.0  ;;  %v825_v20 = vadd.f32 %v1093_v1, %v824_v16  ;;  %v857_v21 = vadd.f32 %v1093_v1, %v856_v17 }
 0x2d2   : > { %v1382_v24 = vpop.f32.mrf.mxu0  ;;  %v1390_v25 = vpop.f32.mrf.mxu1 }
 0x2d3   : > { %v1202_v26 = vpack.c.bf16 %v887_v18, %v886_v14  ;;  %v1222_v27 = vpack.c.bf16 %v895_v19, %v894_v15  ;;  %v885_v28 = vmax.f32 %v825_v20, 0.0  ;;  %v893_v29 = vmax.f32 %v857_v21, 0.0 }
 0x2d4   : > { %v846_v30 = vadd.f32 %v1382_v24, %v1093_v1  ;;  %v878_v31 = vadd.f32 %v1390_v25, %v1093_v1  ;;  %v837_v32 = vpop.f32.mrf.mxu0  ;;  %v869_v33 = vpop.f32.mrf.mxu1 }
 0x2d5   : > { %1241 = vst [vmem:[%s1648_s5 + $0x8] sm:$0xff] %v1202_v26   ;;  %1245 = vst [vmem:[%s1648_s5 + $0x28] sm:$0xff] %v1222_v27   ;;  %v1197_v34 = vpack.c.bf16 %v885_v28, %v884_v22  ;;  %v1217_v35 = vpack.c.bf16 %v893_v29, %v892_v23  ;;  %v838_v36 = vadd.f32 %v1093_v1, %v837_v32 }
 0x2d6   : > { %v870_v37 = vadd.f32 %v1093_v1, %v869_v33  ;;  %v1383_v38 = vpop.f32.mrf.mxu0  ;;  %v1391_v39 = vpop.f32.mrf.mxu1  ;;  %v890_v42 = vmax.f32 %v846_v30, 0.0  ;;  %v898_v43 = vmax.f32 %v878_v31, 0.0 }
 0x2d7   : > { %1198 = vst [vmem:[%s1648_s5] sm:$0xff] %v1197_v34   ;;  %1244 = vst [vmem:[%s1648_s5 + $0x20] sm:$0xff] %v1217_v35   ;;  %v849_v40 = vadd.f32 %v1383_v38, %v1093_v1  ;;  %v881_v41 = vadd.f32 %v1391_v39, %v1093_v1  ;;  %v888_v50 = vmax.f32 %v838_v36, 0.0 }
 0x2d8   : > { %v840_v44 = vpop.f32.mrf.mxu0  ;;  %v872_v45 = vpop.f32.mrf.mxu1  ;;  %v896_v51 = vmax.f32 %v870_v37, 0.0 }
 0x2d9   : > { %v891_v46 = vmax.f32 %v849_v40, 0.0  ;;  %v899_v47 = vmax.f32 %v881_v41, 0.0  ;;  %v841_v48 = vadd.f32 %v1093_v1, %v840_v44  ;;  %v873_v49 = vadd.f32 %v1093_v1, %v872_v45 }
 0x2db   : > { %v1212_v52 = vpack.c.bf16 %v891_v46, %v890_v42  ;;  %v1232_v53 = vpack.c.bf16 %v899_v47, %v898_v43  ;;  %v889_v54 = vmax.f32 %v841_v48, 0.0  ;;  %v897_v55 = vmax.f32 %v873_v49, 0.0 }
 0x2dd   : > { %1243 = vst [vmem:[%s1648_s5 + $0x18] sm:$0xff] %v1212_v52   ;;  %1247 = vst [vmem:[%s1648_s5 + $0x38] sm:$0xff] %v1232_v53   ;;  %v1207_v56 = vpack.c.bf16 %v889_v54, %v888_v50  ;;  %v1227_v57 = vpack.c.bf16 %v897_v55, %v896_v51 }
 0x2df   : > { %1242 = vst [vmem:[%s1648_s5 + $0x10] sm:$0xff] %v1207_v56   ;;  %1246 = vst [vmem:[%s1648_s5 + $0x30] sm:$0xff] %v1227_v57  }
 0x2e0 PF: > { %s15_s20 = sadd.s32 1, %s1478_s20   ;;  %s1649_s18 = smov %s1474_s19 }
 0x2e1   : > { %p12_p6 = scmp.ge.s32.totalorder %s15_s20, 4   ;;  %s1650_s19 = smov %s1652_s21 }
 0x2e3   :  { %14 = sbr.rel (!%p12_p6) target bundleno = 2 (0x2), region = 79 }

</bundles_post_ra>
